<compile_context>
chip_gen: v5e
topology: v5e:2x2
jax: 0.10.0
libtpu: 0.0.40
codegen_flags: <defaults>
</compile_context>

<pallas_src>
import functools
import math

import jax
import jax.numpy as jnp
from jax.experimental import pallas as pl
from jax.experimental.pallas import tpu as pltpu


def _mhsa_kernel(x_ref, wqkv_ref, wo_ref, mask_ref, out_ref,
                 *, n_heads: int, d_head: int, scale: float):
    nb, S, D = x_ref.shape
    R = nb * S

    # (nb, S, D) -> (nb*S, D): merges leading dims only (lane dim untouched).
    x2d = x_ref[...].reshape(R, D)

    # Fused Q/K/V projection: single (R, D) @ (D, 3D) matmul, f32 accumulation.
    qkv = jnp.dot(x2d, wqkv_ref[...], preferred_element_type=jnp.float32)
    q2d = qkv[:, 0 * D:1 * D] * jnp.float32(scale)   # softmax scale folded once into Q
    k2d = qkv[:, 1 * D:2 * D]
    v2d = qkv[:, 2 * D:3 * D]

    def split_heads(t):
        # (R, D) -> (H*nb, S, Dh); batch index b = h*nb + n.  One-time packing
        # (static lane slices + major-dim stack), no slicing inside the matmuls.
        heads = [t[:, h * d_head:(h + 1) * d_head] for h in range(n_heads)]
        t3 = jnp.stack(heads, axis=0)                     # (H, nb*S, Dh)
        return t3.reshape(n_heads * nb, S, d_head)        # leading-dim regroup

    qh = split_heads(q2d)
    kh = split_heads(k2d)
    vh = split_heads(v2d)

    # Head-batched attention logits (contraction expressed directly, no K^T).
    logits = jnp.einsum('bqd,bkd->bqk', qh, kh,
                        preferred_element_type=jnp.float32)      # (H*nb, S, S)

    # Exact torch semantics: masked entries become -1e9 BEFORE the scale multiply,
    # i.e. (-1e9 * scale) in the already-scaled logits.  Same (S, S) mask for every
    # batch row and head.
    neg = jnp.float32(-1.0e9 * scale)
    logits = jnp.where(mask_ref[...][None, :, :] != 0.0, neg, logits)

    # Softmax over the key axis; normalise with the EUP approximate reciprocal.
    logits = logits - jnp.max(logits, axis=-1, keepdims=True)
    p = jnp.exp(logits)
    p = p * pl.reciprocal(jnp.sum(p, axis=-1, keepdims=True), approx=True)

    # attn @ V, head-batched.
    z = jnp.einsum('bqk,bkd->bqd', p.astype(vh.dtype), vh,
                   preferred_element_type=jnp.float32)           # (H*nb, S, Dh)

    # Undo the head packing: (H*nb, S, Dh) -> (H, R, Dh) -> (R, D) with column
    # layout h*Dh + d (matches Wo's row layout).
    z3 = z.reshape(n_heads, R, d_head)
    z2d = jnp.concatenate([z3[h] for h in range(n_heads)], axis=-1)

    # Single full-width output projection + residual add.
    out2d = x2d.astype(jnp.float32) + jnp.dot(z2d, wo_ref[...],
                                              preferred_element_type=jnp.float32)
    # NOTE: for small D at larger scale, presenting the output as (N, S*D) would
    # make the writeback lane-dense; at these shapes the sublane->lane relayout
    # would cost more than the tiny store.
    out_ref[...] = out2d.reshape(nb, S, D).astype(out_ref.dtype)


def _pick_batch_block(n: int, s: int, target_rows: int = 512) -> int:
    """Largest batch-block nb dividing n with nb*s <= target_rows (else 1)."""
    divisors = [nb for nb in range(1, n + 1) if n % nb == 0]
    fitting = [nb for nb in divisors if nb * s <= target_rows]
    return max(fitting) if fitting else 1


def mhsa_pallas(x, wq, wk, wv, wo, mask_inds=None, *, n_heads: int):
    N, S, D = x.shape
    assert D % n_heads == 0
    d_head = D // n_heads
    scale = 1.0 / math.sqrt(float(d_head))

    # One-time weight-layout prep: fused QKV weight (D, 3D) -> single in-kernel matmul.
    wqkv = jnp.concatenate([wq, wk, wv], axis=1)

    # Densify the (2, M) index list into a (S, S) 0/1 select mask.
    # (For non-tiny S this would instead be a scalar-prefetch index list or
    # in-kernel iota compares to avoid the S*S residency.)
    if mask_inds is None:
        mask = jnp.zeros((S, S), jnp.float32)
    else:
        mask = jnp.zeros((S, S), jnp.float32).at[mask_inds[0], mask_inds[1]].set(1.0)

    nb = _pick_batch_block(N, S)
    grid = (N // nb,)

    kernel = functools.partial(_mhsa_kernel, n_heads=n_heads, d_head=d_head, scale=scale)

    return pl.pallas_call(
        kernel,
        out_shape=jax.ShapeDtypeStruct((N, S, D), x.dtype),
        grid_spec=pltpu.PrefetchScalarGridSpec(
            num_scalar_prefetch=0,
            grid=grid,
            in_specs=[
                pl.BlockSpec((nb, S, D), lambda i: (i, 0, 0)),     # x (nb batch rows)
                pl.BlockSpec((D, 3 * D), lambda i: (0, 0)),        # W_qkv (fused)
                pl.BlockSpec((D, D), lambda i: (0, 0)),            # W_o
                pl.BlockSpec((S, S), lambda i: (0, 0)),            # 0/1 mask
            ],
            out_specs=pl.BlockSpec((nb, S, D), lambda i: (i, 0, 0)),
        ),
        compiler_params=pltpu.CompilerParams(dimension_semantics=("parallel",)),
    )(x, wqkv, wo, mask)


def mhsa_ref(x, wq, wk, wv, wo, mask_inds, n_heads):
    """Pure-JAX reference mirroring the PyTorch forward."""
    N, S, D = x.shape
    dh = D // n_heads
    q = (x @ wq).reshape(N, S, n_heads, dh)
    k = (x @ wk).reshape(N, S, n_heads, dh)
    v = (x @ wv).reshape(N, S, n_heads, dh)
    attn = jnp.einsum('nqhd,nkhd->nqkh', q, k)
    if mask_inds is not None:
        attn = attn.at[:, mask_inds[0], mask_inds[1]].set(-1.0e9)
    attn = jax.nn.softmax(attn * (1.0 / math.sqrt(dh)), axis=-2)
    z = jnp.einsum('nqkh,nkhd->nqhd', attn, v).reshape(N, S, D)
    return x + z @ wo


if __name__ == "__main__":
    N, S, d_model, n_heads = 2, 8, 32, 4

    key = jax.random.PRNGKey(0)
    kx, kq, kk, kv, ko = jax.random.split(key, 5)

    x = jax.random.normal(kx, (N, S, d_model), jnp.float32)
    # Deterministic "Linear(bias=False)"-style init (fan_in uniform), pre-transposed to (in, out).
    bound = 1.0 / math.sqrt(d_model)
    wq = jax.random.uniform(kq, (d_model, d_model), jnp.float32, -bound, bound)
    wk = jax.random.uniform(kk, (d_model, d_model), jnp.float32, -bound, bound)
    wv = jax.random.uniform(kv, (d_model, d_model), jnp.float32, -bound, bound)
    wo = jax.random.uniform(ko, (d_model, d_model), jnp.float32, -bound, bound)

    # Mask out attention at (q=0,k=3), (q=1,k=4), (q=2,k=5).
    mask_inds = jnp.array([[0, 1, 2], [3, 4, 5]], jnp.int32)

    out = mhsa_pallas(x, wq, wk, wv, wo, mask_inds, n_heads=n_heads)
    out = jax.block_until_ready(out)

    ref = mhsa_ref(x, wq, wk, wv, wo, mask_inds, n_heads)
    assert out.shape == (N, S, d_model)
    # Tolerance accounts for the EUP approximate-reciprocal softmax normalisation.
    assert jnp.allclose(out, ref, atol=2e-3, rtol=2e-3), "mismatch vs reference"

    print("KERNEL_OK")
</pallas_src>

<mosaic_0001>
module attributes {stable_mosaic.version = 11 : i64} {
  func.func @_mhsa_kernel(%arg0: i32, %arg1: memref<2x8x32xf32, #tpu.memory_space<vmem>>, %arg2: memref<32x96xf32, #tpu.memory_space<vmem>>, %arg3: memref<32x32xf32, #tpu.memory_space<vmem>>, %arg4: memref<8x8xf32, #tpu.memory_space<vmem>>, %arg5: memref<2x8x32xf32, #tpu.memory_space<vmem>>) attributes {dimension_semantics = [#tpu.dimension_semantics<parallel>], iteration_bounds = array<i64: 1>, scalar_prefetch = 0 : i64, scratch_operands = 0 : i64, tpu.core_type = #tpu.core_type<tc>, window_params = [{transform_indices = @transform_0, window_bounds = array<i64: 2, 8, 32>}, {pipeline_mode = #tpu.pipeline_mode<synchronous>, transform_indices = @transform_1, window_bounds = array<i64: 32, 96>}, {pipeline_mode = #tpu.pipeline_mode<synchronous>, transform_indices = @transform_2, window_bounds = array<i64: 32, 32>}, {pipeline_mode = #tpu.pipeline_mode<synchronous>, transform_indices = @transform_3, window_bounds = array<i64: 8, 8>}, {transform_indices = @transform_4, window_bounds = array<i64: 2, 8, 32>}]} {
    %c0 = arith.constant 0 : index
    %c0_0 = arith.constant 0 : index
    %c0_1 = arith.constant 0 : index
    %0 = vector.load %arg1[%c0, %c0_0, %c0_1] : memref<2x8x32xf32, #tpu.memory_space<vmem>>, vector<2x8x32xf32>
    %1 = vector.shape_cast %0 : vector<2x8x32xf32> to vector<16x32xf32>
    %c0_2 = arith.constant 0 : index
    %c0_3 = arith.constant 0 : index
    %2 = vector.load %arg2[%c0_2, %c0_3] : memref<32x96xf32, #tpu.memory_space<vmem>>, vector<32x96xf32>
    %cst = arith.constant dense<0.000000e+00> : vector<16x96xf32>
    %3 = tpu.matmul %1, %2, %cst {dimension_numbers = #tpu.dot_dimension_numbers<[1], [0], [0], [1], [0, 0, 1, 1], [], []>} : vector<16x32xf32>, vector<32x96xf32>, vector<16x96xf32> -> vector<16x96xf32>
    %4 = vector.extract_strided_slice %3 {offsets = [0, 0], sizes = [16, 32], strides = [1, 1]} : vector<16x96xf32> to vector<16x32xf32>
    %cst_4 = arith.constant 0.353553385 : f32
    %5 = vector.broadcast %cst_4 : f32 to vector<16x32xf32>
    %6 = arith.mulf %4, %5 : vector<16x32xf32>
    %7 = vector.extract_strided_slice %3 {offsets = [0, 32], sizes = [16, 32], strides = [1, 1]} : vector<16x96xf32> to vector<16x32xf32>
    %8 = vector.extract_strided_slice %3 {offsets = [0, 64], sizes = [16, 32], strides = [1, 1]} : vector<16x96xf32> to vector<16x32xf32>
    %9 = vector.extract_strided_slice %6 {offsets = [0, 0], sizes = [16, 8], strides = [1, 1]} : vector<16x32xf32> to vector<16x8xf32>
    %10 = vector.extract_strided_slice %6 {offsets = [0, 8], sizes = [16, 8], strides = [1, 1]} : vector<16x32xf32> to vector<16x8xf32>
    %11 = vector.extract_strided_slice %6 {offsets = [0, 16], sizes = [16, 8], strides = [1, 1]} : vector<16x32xf32> to vector<16x8xf32>
    %12 = vector.extract_strided_slice %6 {offsets = [0, 24], sizes = [16, 8], strides = [1, 1]} : vector<16x32xf32> to vector<16x8xf32>
    %13 = vector.shape_cast %9 : vector<16x8xf32> to vector<1x16x8xf32>
    %14 = vector.shape_cast %10 : vector<16x8xf32> to vector<1x16x8xf32>
    %15 = vector.shape_cast %11 : vector<16x8xf32> to vector<1x16x8xf32>
    %16 = vector.shape_cast %12 : vector<16x8xf32> to vector<1x16x8xf32>
    %17 = tpu.concatenate %13, %14, %15, %16 in 0 : vector<1x16x8xf32>, vector<1x16x8xf32>, vector<1x16x8xf32>, vector<1x16x8xf32> -> vector<4x16x8xf32>
    %18 = vector.shape_cast %17 : vector<4x16x8xf32> to vector<8x8x8xf32>
    %19 = vector.extract_strided_slice %7 {offsets = [0, 0], sizes = [16, 8], strides = [1, 1]} : vector<16x32xf32> to vector<16x8xf32>
    %20 = vector.extract_strided_slice %7 {offsets = [0, 8], sizes = [16, 8], strides = [1, 1]} : vector<16x32xf32> to vector<16x8xf32>
    %21 = vector.extract_strided_slice %7 {offsets = [0, 16], sizes = [16, 8], strides = [1, 1]} : vector<16x32xf32> to vector<16x8xf32>
    %22 = vector.extract_strided_slice %7 {offsets = [0, 24], sizes = [16, 8], strides = [1, 1]} : vector<16x32xf32> to vector<16x8xf32>
    %23 = vector.shape_cast %19 : vector<16x8xf32> to vector<1x16x8xf32>
    %24 = vector.shape_cast %20 : vector<16x8xf32> to vector<1x16x8xf32>
    %25 = vector.shape_cast %21 : vector<16x8xf32> to vector<1x16x8xf32>
    %26 = vector.shape_cast %22 : vector<16x8xf32> to vector<1x16x8xf32>
    %27 = tpu.concatenate %23, %24, %25, %26 in 0 : vector<1x16x8xf32>, vector<1x16x8xf32>, vector<1x16x8xf32>, vector<1x16x8xf32> -> vector<4x16x8xf32>
    %28 = vector.shape_cast %27 : vector<4x16x8xf32> to vector<8x8x8xf32>
    %29 = vector.extract_strided_slice %8 {offsets = [0, 0], sizes = [16, 8], strides = [1, 1]} : vector<16x32xf32> to vector<16x8xf32>
    %30 = vector.extract_strided_slice %8 {offsets = [0, 8], sizes = [16, 8], strides = [1, 1]} : vector<16x32xf32> to vector<16x8xf32>
    %31 = vector.extract_strided_slice %8 {offsets = [0, 16], sizes = [16, 8], strides = [1, 1]} : vector<16x32xf32> to vector<16x8xf32>
    %32 = vector.extract_strided_slice %8 {offsets = [0, 24], sizes = [16, 8], strides = [1, 1]} : vector<16x32xf32> to vector<16x8xf32>
    %33 = vector.shape_cast %29 : vector<16x8xf32> to vector<1x16x8xf32>
    %34 = vector.shape_cast %30 : vector<16x8xf32> to vector<1x16x8xf32>
    %35 = vector.shape_cast %31 : vector<16x8xf32> to vector<1x16x8xf32>
    %36 = vector.shape_cast %32 : vector<16x8xf32> to vector<1x16x8xf32>
    %37 = tpu.concatenate %33, %34, %35, %36 in 0 : vector<1x16x8xf32>, vector<1x16x8xf32>, vector<1x16x8xf32>, vector<1x16x8xf32> -> vector<4x16x8xf32>
    %38 = vector.shape_cast %37 : vector<4x16x8xf32> to vector<8x8x8xf32>
    "tpu.trace_start"() <{level = 10 : i32, message = "bqd,bkd->bqk"}> : () -> ()
    %cst_5 = arith.constant dense<0.000000e+00> : vector<8x8x8xf32>
    %39 = tpu.matmul %18, %28, %cst_5 {dimension_numbers = #tpu.dot_dimension_numbers<[2], [2], [1], [1], [0, 0, 0, 1, 1, 1], [0], [0]>} : vector<8x8x8xf32>, vector<8x8x8xf32>, vector<8x8x8xf32> -> vector<8x8x8xf32>
    "tpu.trace_stop"() : () -> ()
    %c0_6 = arith.constant 0 : index
    %c0_7 = arith.constant 0 : index
    %40 = vector.load %arg4[%c0_6, %c0_7] : memref<8x8xf32, #tpu.memory_space<vmem>>, vector<8x8xf32>
    %41 = vector.shape_cast %40 : vector<8x8xf32> to vector<1x8x8xf32>
    %cst_8 = arith.constant 0.000000e+00 : f32
    %42 = vector.broadcast %cst_8 : f32 to vector<1x8x8xf32>
    %43 = arith.cmpf one, %41, %42 : vector<1x8x8xf32>
    %cst_9 = arith.constant 0xCDA8965F : f32
    %44 = vector.shape_cast %43 : vector<1x8x8xi1> to vector<1x8x8xi1>
    %45 = vector.broadcast %44 : vector<1x8x8xi1> to vector<8x8x8xi1>
    %46 = vector.broadcast %cst_9 : f32 to vector<8x8x8xf32>
    %47 = arith.select %45, %46, %39 : vector<8x8x8xi1>, vector<8x8x8xf32>
    %cst_10 = arith.constant dense<0xFF800000> : vector<8x8xf32>
    %48 = vector.multi_reduction <maximumf>, %47, %cst_10 [2] : vector<8x8x8xf32> to vector<8x8xf32>
    %49 = vector.shape_cast %48 : vector<8x8xf32> to vector<8x8x1xf32>
    %50 = vector.broadcast %49 : vector<8x8x1xf32> to vector<8x8x8xf32>
    %51 = arith.subf %47, %50 : vector<8x8x8xf32>
    %52 = math.exp %51 : vector<8x8x8xf32>
    %cst_11 = arith.constant dense<0.000000e+00> : vector<8x8xf32>
    %53 = vector.multi_reduction <add>, %52, %cst_11 [2] : vector<8x8x8xf32> to vector<8x8xf32>
    %54 = vector.shape_cast %53 : vector<8x8xf32> to vector<8x8x1xf32>
    %55 = tpu.reciprocal %54 {approx = true} : vector<8x8x1xf32> -> vector<8x8x1xf32>
    %56 = vector.broadcast %55 : vector<8x8x1xf32> to vector<8x8x8xf32>
    %57 = arith.mulf %52, %56 : vector<8x8x8xf32>
    "tpu.trace_start"() <{level = 10 : i32, message = "bqk,bkd->bqd"}> : () -> ()
    %cst_12 = arith.constant dense<0.000000e+00> : vector<8x8x8xf32>
    %58 = tpu.matmul %57, %38, %cst_12 {dimension_numbers = #tpu.dot_dimension_numbers<[2], [1], [1], [2], [0, 0, 0, 1, 1, 2], [0], [0]>} : vector<8x8x8xf32>, vector<8x8x8xf32>, vector<8x8x8xf32> -> vector<8x8x8xf32>
    "tpu.trace_stop"() : () -> ()
    %59 = vector.shape_cast %58 : vector<8x8x8xf32> to vector<4x16x8xf32>
    %60 = vector.extract_strided_slice %59 {offsets = [0, 0, 0], sizes = [1, 16, 8], strides = [1, 1, 1]} : vector<4x16x8xf32> to vector<1x16x8xf32>
    %61 = vector.shape_cast %60 : vector<1x16x8xf32> to vector<16x8xf32>
    %62 = vector.extract_strided_slice %59 {offsets = [1, 0, 0], sizes = [1, 16, 8], strides = [1, 1, 1]} : vector<4x16x8xf32> to vector<1x16x8xf32>
    %63 = vector.shape_cast %62 : vector<1x16x8xf32> to vector<16x8xf32>
    %64 = vector.extract_strided_slice %59 {offsets = [2, 0, 0], sizes = [1, 16, 8], strides = [1, 1, 1]} : vector<4x16x8xf32> to vector<1x16x8xf32>
    %65 = vector.shape_cast %64 : vector<1x16x8xf32> to vector<16x8xf32>
    %66 = vector.extract_strided_slice %59 {offsets = [3, 0, 0], sizes = [1, 16, 8], strides = [1, 1, 1]} : vector<4x16x8xf32> to vector<1x16x8xf32>
    %67 = vector.shape_cast %66 : vector<1x16x8xf32> to vector<16x8xf32>
    %68 = tpu.concatenate %61, %63, %65, %67 in 1 : vector<16x8xf32>, vector<16x8xf32>, vector<16x8xf32>, vector<16x8xf32> -> vector<16x32xf32>
    %c0_13 = arith.constant 0 : index
    %c0_14 = arith.constant 0 : index
    %69 = vector.load %arg3[%c0_13, %c0_14] : memref<32x32xf32, #tpu.memory_space<vmem>>, vector<32x32xf32>
    %cst_15 = arith.constant dense<0.000000e+00> : vector<16x32xf32>
    %70 = tpu.matmul %68, %69, %cst_15 {dimension_numbers = #tpu.dot_dimension_numbers<[1], [0], [0], [1], [0, 0, 1, 1], [], []>} : vector<16x32xf32>, vector<32x32xf32>, vector<16x32xf32> -> vector<16x32xf32>
    %71 = arith.addf %1, %70 : vector<16x32xf32>
    %72 = vector.shape_cast %71 : vector<16x32xf32> to vector<2x8x32xf32>
    %c0_16 = arith.constant 0 : index
    %c0_17 = arith.constant 0 : index
    %c0_18 = arith.constant 0 : index
    %73 = vector.load %arg5[%c0_16, %c0_17, %c0_18] : memref<2x8x32xf32, #tpu.memory_space<vmem>>, vector<2x8x32xf32>
    tpu.vector_store %arg5[%c0_16, %c0_17, %c0_18], %72 {strides = array<i32>} : memref<2x8x32xf32, #tpu.memory_space<vmem>>, vector<2x8x32xf32>,
    return
  }
  func.func @transform_0(%arg0: i32) -> (i32, i32, i32) {
    %c0_i32 = arith.constant 0 : i32
    %c0_i32_0 = arith.constant 0 : i32
    %c0_i32_1 = arith.constant 0 : i32
    return %arg0, %c0_i32, %c0_i32_0 : i32, i32, i32
  }
  func.func @transform_1(%arg0: i32) -> (i32, i32) {
    %c0_i32 = arith.constant 0 : i32
    %c0_i32_0 = arith.constant 0 : i32
    %c0_i32_1 = arith.constant 0 : i32
    return %c0_i32, %c0_i32_0 : i32, i32
  }
  func.func @transform_2(%arg0: i32) -> (i32, i32) {
    %c0_i32 = arith.constant 0 : i32
    %c0_i32_0 = arith.constant 0 : i32
    %c0_i32_1 = arith.constant 0 : i32
    return %c0_i32, %c0_i32_0 : i32, i32
  }
  func.func @transform_3(%arg0: i32) -> (i32, i32) {
    %c0_i32 = arith.constant 0 : i32
    %c0_i32_0 = arith.constant 0 : i32
    %c0_i32_1 = arith.constant 0 : i32
    return %c0_i32, %c0_i32_0 : i32, i32
  }
  func.func @transform_4(%arg0: i32) -> (i32, i32, i32) {
    %c0_i32 = arith.constant 0 : i32
    %c0_i32_0 = arith.constant 0 : i32
    %c0_i32_1 = arith.constant 0 : i32
    return %arg0, %c0_i32, %c0_i32_0 : i32, i32, i32
  }
}

</mosaic_0001>

<bundles_post_ra>
// kernel: tpu_custom_call.1
= control target key start
LH: loop header
LB: loop body
LE: loop exit
PB: predicated region body
PF: predicated region fallthrough
CT: control target
= control target key end

     0   :  { %9 = vsyncpa [#allocation3], 0  ;;  %s1169_s0 = inlined_call_operand.hbm [shape: f32[2,8,32], index: 0, kind: input, shape index: {}]   ;;  %s1170_s1 = inlined_call_operand.hbm [shape: f32[32,96], index: 1, kind: input, shape index: {}]   ;;  %s1171_s2 = inlined_call_operand.hbm [shape: f32[32,32], index: 2, kind: input, shape index: {}]   ;;  %s1172_s3 = inlined_call_operand.hbm [shape: f32[8,8], index: 3, kind: input, shape index: {}]   ;;  %s1173_s4 = inlined_call_operand.hbm [shape: f32[2,8,32], index: 4, kind: output, shape index: {}]  }
   0x1   :  { %10 = vsyncpa [#allocation6], 0 }
   0x2   :  { %11 = vsyncpa [#allocation9], 0 }
   0x3   :  { %12 = vsyncpa [#allocation4], 0  ;;  %s30_s17 = sshll.u32 %s1170_s1, 4  ;;  %s969_s18 = smov [#allocation5]   ;;  %s31_s17 = int_to_ptr.hbm [resolvable:$true] %s30_s17 }
   0x4   :  { %s32_s19 = sshll.u32 %s969_s18, 4  ;;  %s17_s22 = sshll.u32 %s1169_s0, 4  ;;  %s33_s19 = int_to_ptr.vmem [resolvable:$true] %s32_s19  ;;  %s18_s22 = int_to_ptr.hbm [resolvable:$true] %s17_s22 }
   0x5   :  { %s970_s23 = smov 128   ;;  %s971_s24 = smov 8  }
   0x6   :  { %38 = dma.hbm_to_vmem [thread:$0]  %s31_s17, 512, %s33_s19, [#allocation6], %s970_s23, %s970_s23, %s971_s24  }
   0x7   :  { %s972_s25 = smov [#allocation2]   ;;  %s43_s1 = sshll.u32 %s1171_s2, 4  ;;  %s44_s1 = int_to_ptr.hbm [resolvable:$true] %s43_s1 }
   0x8   :  { %s19_s26 = sshll.u32 %s972_s25, 4  ;;  %s57_s30 = sshll.u32 %s1172_s3, 4  ;;  %s20_s26 = int_to_ptr.vmem [resolvable:$true] %s19_s26  ;;  %s58_s30 = int_to_ptr.hbm [resolvable:$true] %s57_s30 }
   0x9   :  { %25 = dma.hbm_to_vmem [thread:$0]  %s18_s22, 256, %s20_s26, [#allocation3], %s970_s23, %s970_s23, %s971_s24  }
   0xa   :  { %s973_s5 = smov [#allocation7]   ;;  %s974_s7 = smov [#allocation8]  }
   0xb   :  { %s45_s6 = sshll.u32 %s973_s5, 4  ;;  %s59_s2 = sshll.u32 %s974_s7, 4  ;;  %s46_s6 = int_to_ptr.vmem [resolvable:$true] %s45_s6  ;;  %s60_s2 = int_to_ptr.vmem [resolvable:$true] %s59_s2 }
   0xc   :  { %51 = dma.hbm_to_vmem [thread:$0]  %s44_s1, 512, %s46_s6, [#allocation6], %s970_s23, %s970_s23, %s971_s24  }
   0xd   :  { %62 = dma.hbm_to_vmem [thread:$0]  %s58_s30, 128, %s60_s2, [#allocation9]  }
   0xe   :  { %961 = dma.done.wait [#allocation3], 256  }
   0xf   :  { %962 = vsyncadd [#allocation3], 4294967040 }
  0x10   :  { %963 = dma.done.wait [#allocation6], 1024  }
  0x11   :  { %964 = vsyncadd [#allocation6], 4294966272 }
  0x12   :  { %965 = dma.done.wait [#allocation9], 128  }
  0x13   :  { %966 = vsyncadd [#allocation9], 4294967168  ;;  %v84_v0 = vld [vmem:[#allocation5 + $0x18] sm:$0xff]  ;;  %v83_v1 = vld [vmem:[#allocation5 + $0x10] sm:$0xff]  ;;  %vm85_vm0 = vcmask 261120   ;;  %s975_s3 = smov 104  }
  0x14   :  { %104 = vmatpush.msra.mxu0 %v84_v0  ;;  %v82_v2 = vld [vmem:[#allocation5 + $0x8] sm:$0xff]  ;;  %v81_v3 = vld [vmem:[#allocation5] sm:$0xff]  ;;  %v1029_v4 = vld [vmem:[#allocation2] sm:$0xff]  ;;  %s976_s8 = smov 112   ;;  %s977_s9 = smov 120   ;;  %vm147_vm1 = vcmask 64512  }
  0x15   :  { %v1033_v5 = vld [vmem:[#allocation2 + $0x8] sm:$0xff]  ;;  %s978_s10 = smov 96   ;;  %v354_v31 = vld [vmem:[#allocation8] sm:$0xff]  ;;  %s979_s11 = smov 64   ;;  %vm688_vm3 = vcmask 130048   ;;  %vm691_vm4 = vcmask 195584  }
  0x16   :  { %105 = vmatpush.msra.mxu0 %v83_v1  ;;  %vm355_vm2 = vcmp.ne.f32.partialorder %v354_v31, 0.0  ;;  %s980_s12 = smov 24   ;;  %s981_s13 = smov 16  }
  0x17   :  { %s982_s14 = smov [#allocation10]   ;;  %s737_s18 = sshll.u32 %s1173_s4, 4  ;;  %s738_s18 = int_to_ptr.hbm [resolvable:$true] %s737_s18 }
  0x18   :  { %106 = vmatpush.msra.mxu0 %v82_v2  ;;  %s735_s15 = sshll.u32 %s982_s14, 4  ;;  %s736_s15 = int_to_ptr.vmem [resolvable:$true] %s735_s15 }
  0x1a   :  { %107 = vmatpush.msra.mxu0 %v81_v3 }
  0x1b   :  { %752 = vmatmul.msk.f32.vlgmr.msra.gmra.mxu0 %vm85_vm0, %v1029_v4 }
  0x23   :  { %753 = vmatmul.msk.f32.gmra.mxu0 %vm85_vm0, %v1033_v5 }
  0x98   :  { %v1037_v6 = vpop.f32.mrf.mxu0 }
  0x99   :  { %141 = vrot.lane.b32.xlu2 %v1037_v6, %s975_s3  ;;  %137 = vrot.lane.b32.xlu0 %v1037_v6, %s976_s8  ;;  %v115_v8 = vmul.f32 0.35355338, %v1037_v6 }
  0xa0   :  { %v1042_v7 = vpop.f32.mrf.mxu0 }
  0xa1   :  { %133 = vrot.lane.b32.xlu0 %v1037_v6, %s977_s9  ;;  %139 = vrot.lane.b32.xlu2 %v1042_v7, %s976_s8  ;;  %v116_v9 = vmul.f32 0.35355338, %v1042_v7 }
  0xa2   :  { %135 = vrot.lane.b32.xlu1 %v1042_v7, %s977_s9 }
  0xa9   :  { %123 = vrot.lane.b32.xlu0 %v115_v8, %s976_s8 }
  0xaa   :  { %143 = vrot.lane.b32.xlu1 %v1042_v7, %s975_s3 }
  0xb1   :  { %172 = vrot.lane.b32.xlu0 %v1042_v7, %s978_s10 }
  0xb2   :  { %145 = vrot.lane.b32.xlu1 %v1037_v6, %s978_s10 }
  0xb9   :  { %119 = vrot.lane.b32.xlu0 %v115_v8, %s977_s9 }
  0xba   :  { %121 = vrot.lane.b32.xlu1 %v116_v9, %s977_s9 }
  0xc1   :  { %129 = vrot.lane.b32.xlu0 %v116_v9, %s975_s3 }
  0xc9   :  { %127 = vrot.lane.b32.xlu0 %v115_v8, %s975_s3 }
  0xf3   :  { %v1065_v14 = vpop.permute.xlu2 %141 }
  0xfb   :  { %v1071_v18 = vpop.permute.xlu2 %139 }
 0x10b   :  { %v1054_v10 = vpop.permute.xlu0 %137 }
 0x10c   :  { %250 = vrot.lane.b32.xlu2 %v1054_v10, %s978_s10 }
 0x113   :  { %v1057_v11 = vpop.permute.xlu0 %133 }
 0x114   :  { %v1059_v12 = vpop.permute.xlu1 %135  ;;  %198 = vrot.lane.b32.xlu1 %v1057_v11, %s978_s10  ;;  %v794_v50 = vpack.i.bf16 %v1057_v11, %v1037_v6 }
 0x115   :  { %v799_v13 = vpack.i.bf16 %v1059_v12, %v1054_v10  ;;  %224 = vrot.lane.b32.xlu2 %v1059_v12, %s978_s10 }
 0x11b   :  { %v124_v15 = vpop.permute.xlu0 %123 }
 0x11c   :  { %v1067_v16 = vpop.permute.xlu1 %143  ;;  %302 = vrot.lane.b32.xlu1 %v1065_v14, %s978_s10 }
 0x11d   :  { %328 = vrot.lane.b32.xlu2 %v1067_v16, %s978_s10 }
 0x123   :  { %v173_v17 = vpop.permute.xlu0 %172 }
 0x124   :  { %v146_v19 = vpop.permute.xlu1 %145  ;;  %756 = vmatpush.xpose.msk.msra.mxu2 %vm147_vm1, %v173_v17  ;;  %125 = vrot.lane.b32.xlu1 %v116_v9, %s976_s8 }
 0x125   :  { %276 = vrot.lane.b32.xlu2 %v1071_v18, %s978_s10  ;;  %754 = vmatpush.xpose.msk.msra.mxu1 %vm147_vm1, %v146_v19 }
 0x127   :  { %757 = vmatmul.msk.f32.vlgmr.msra.gmra.mxu2 %vm147_vm1, %v116_v9 }
 0x128   :  { %755 = vmatmul.msk.f32.vlgmr.msra.gmra.mxu1 %vm147_vm1, %v115_v8 }
 0x12b   :  { %v120_v22 = vpop.permute.xlu0 %119 }
 0x12c   :  { %v122_v23 = vpop.permute.xlu1 %121 }
 0x133   :  { %v130_v25 = vpop.permute.xlu0 %129 }
 0x13b   :  { %v128_v29 = vpop.permute.xlu0 %127 }
 0x166   :  { %v251_v20 = vpop.permute.xlu2 %250 }
 0x167   :  { %762 = vmatpush.xpose.msk.msrb.mxu2 %vm147_vm1, %v251_v20 }
 0x16a   :  { %763 = vmatmul.msk.f32.vlgmr.msrb.gmra.mxu2 %vm147_vm1, %v124_v15 }
 0x16f   :  { %v225_v21 = vpop.permute.xlu2 %224 }
 0x170   :  { %760 = vmatpush.xpose.msk.msrb.mxu1 %vm147_vm1, %v225_v21 }
 0x173   :  { %761 = vmatmul.msk.f32.vlgmr.msrb.gmra.mxu1 %vm147_vm1, %v122_v23 }
 0x177   :  { %v329_v24 = vpop.permute.xlu2 %328 }
 0x178   :  { %768 = vmatpush.xpose.msk.msra.mxu2 %vm147_vm1, %v329_v24 }
 0x17b   :  { %769 = vmatmul.msk.f32.vlgmr.msra.gmra.mxu2 %vm147_vm1, %v130_v25 }
 0x17f   :  { %v277_v26 = vpop.permute.xlu2 %276 }
 0x180   :  { %764 = vmatpush.xpose.msk.msra.mxu3 %vm147_vm1, %v277_v26 }
 0x186   :  { %v199_v27 = vpop.permute.xlu1 %198 }
 0x187   :  { %758 = vmatpush.xpose.msk.msrb.mxu0 %vm147_vm1, %v199_v27 }
 0x18a   :  { %759 = vmatmul.msk.f32.vlgmr.msrb.gmra.mxu0 %vm147_vm1, %v120_v22 }
 0x18e   :  { %v303_v28 = vpop.permute.xlu1 %302 }
 0x18f   :  { %766 = vmatpush.xpose.msk.msra.mxu1 %vm147_vm1, %v303_v28 }
 0x192   :  { %767 = vmatmul.msk.f32.vlgmr.msra.gmra.mxu1 %vm147_vm1, %v128_v29 }
 0x196   :  { %v126_v30 = vpop.permute.xlu1 %125 }
 0x197   :  { %765 = vmatmul.msk.f32.vlgmr.msra.gmra.mxu3 %vm147_vm1, %v126_v30 }
 0x1a5   :  { %v169_v32 = vpop.f32.mrf.mxu1 }
 0x1a6   :  { %v358_v33 = vsel %vm355_vm2, -3.5355338e+08, %v169_v32 }
 0x1a7   :  { %v366_v34 = vsel %vm147_vm1, %v358_v33, -inf }
 0x1a8   :  { %367 = vmax.xlane.f32.xlu2 %v366_v34 }
 0x1aa   :  { %v195_v35 = vpop.f32.mrf.mxu2 }
 0x1ab   :  { %v359_v36 = vsel %vm355_vm2, -3.5355338e+08, %v195_v35 }
 0x1ac   :  { %v369_v37 = vsel %vm147_vm1, %v359_v36, -inf }
 0x1b0   :  { %370 = vmax.xlane.f32.xlu2 %v369_v37 }
 0x1ed   :  { %v273_v38 = vpop.f32.mrf.mxu2 }
 0x1ee   :  { %v362_v39 = vsel %vm355_vm2, -3.5355338e+08, %v273_v38 }
 0x1ef   :  { %v378_v40 = vsel %vm147_vm1, %v362_v39, -inf }
 0x1f0   :  { %v247_v41 = vpop.f32.mrf.mxu1  ;;  %379 = vmax.xlane.f32.xlu1 %v378_v40 }
 0x1f1   :  { %v361_v42 = vsel %vm355_vm2, -3.5355338e+08, %v247_v41  ;;  %v804_v41 = vpack.i.bf16 %v1065_v14, %v1042_v7 }
 0x1f2   :  { %v375_v43 = vsel %vm147_vm1, %v361_v42, -inf }
 0x1f3   :  { %376 = vmax.xlane.f32.xlu2 %v375_v43 }
 0x1fe   :  { %v351_v44 = vpop.f32.mrf.mxu2 }
 0x1ff   :  { %v365_v45 = vsel %vm355_vm2, -3.5355338e+08, %v351_v44 }
 0x200   :  { %v387_v46 = vsel %vm147_vm1, %v365_v45, -inf }
 0x201   :  { %388 = vmax.xlane.f32.xlu1 %v387_v46 }
 0x207   :  { %v221_v47 = vpop.f32.mrf.mxu0 }
 0x208   :  { %v360_v48 = vsel %vm355_vm2, -3.5355338e+08, %v221_v47 }
 0x209   :  { %v372_v49 = vsel %vm147_vm1, %v360_v48, -inf }
 0x20a   :  { %373 = vmax.xlane.f32.xlu0 %v372_v49 }
 0x20f   :  { %v325_v62 = vpop.f32.mrf.mxu1 }
 0x210   :  { %v364_v63 = vsel %vm355_vm2, -3.5355338e+08, %v325_v62 }
 0x211   :  { %v384_v1 = vsel %vm147_vm1, %v364_v63, -inf }
 0x21a   :  { %795 = vrot.lane.b32.xlu1 %v794_v50, %s979_s11  ;;  %v299_v51 = vpop.f32.mrf.mxu3 }
 0x21b   :  { %v368_v52 = vpop.xlane.xlu2 %367  ;;  %v363_v53 = vsel %vm355_vm2, -3.5355338e+08, %v299_v51 }
 0x21c   :  { %v390_v54 = vsub.f32 %v358_v33, %v368_v52  ;;  %v381_v55 = vsel %vm147_vm1, %v363_v53, -inf }
 0x21d   :  { %382 = vmax.xlane.f32.xlu2 %v381_v55 }
 0x21e   :  { %v398_v56 = vmul.f32 1.442695, %v390_v54 }
 0x220   :  { %809 = vpow2.f32 %v398_v56 }
 0x223   :  { %v371_v57 = vpop.xlane.xlu2 %370 }
 0x224   :  { %v391_v58 = vsub.f32 %v359_v36, %v371_v57 }
 0x226   :  { %v810_v59 = vpop.eup %809  ;;  %v400_v60 = vmul.f32 1.442695, %v391_v58 }
 0x227   :  { %v414_v61 = vsel %vm147_vm1, %v810_v59, 0.0 }
 0x228   :  { %811 = vpow2.f32 %v400_v60  ;;  %415 = vadd.xlane.f32.xlu0 %v414_v61 }
 0x22e   :  { %v1110_v0 = vpop.eup %811 }
 0x22f   :  { %v417_v2 = vsel %vm147_vm1, %v1110_v0, 0.0 }
 0x230   :  { %385 = vmax.xlane.f32.xlu0 %v384_v1  ;;  %418 = vadd.xlane.f32.xlu2 %v417_v2 }
 0x263   :  { %v380_v3 = vpop.xlane.xlu1 %379 }
 0x264   :  { %v394_v6 = vsub.f32 %v362_v39, %v380_v3 }
 0x266   :  { %v406_v8 = vmul.f32 1.442695, %v394_v6  ;;  %v377_v9 = vpop.xlane.xlu2 %376 }
 0x267   :  { %v393_v11 = vsub.f32 %v361_v42, %v377_v9 }
 0x268   :  { %813 = vpow2.f32 %v406_v8 }
 0x269   :  { %v404_v15 = vmul.f32 1.442695, %v393_v11 }
 0x26b   :  { %815 = vpow2.f32 %v404_v15 }
 0x26e   :  { %v1115_v17 = vpop.eup %813 }
 0x26f   :  { %v426_v19 = vsel %vm147_vm1, %v1115_v17, 0.0 }
 0x270   :  { %427 = vadd.xlane.f32.xlu2 %v426_v19 }
 0x271   :  { %v1119_v20 = vpop.eup %815 }
 0x272   :  { %v423_v21 = vsel %vm147_vm1, %v1119_v20, 0.0 }
 0x273   :  { %424 = vadd.xlane.f32.xlu0 %v423_v21 }
 0x274   :  { %v389_v22 = vpop.xlane.xlu1 %388 }
 0x275   :  { %v397_v23 = vsub.f32 %v365_v45, %v389_v22 }
 0x277   :  { %v412_v24 = vmul.f32 1.442695, %v397_v23 }
 0x279   :  { %817 = vpow2.f32 %v412_v24  ;;  %v697_v24 = vld [vmem:[#allocation7 + $0x18] sm:$0xff] }
 0x27d   :  { %v374_v25 = vpop.xlane.xlu0 %373 }
 0x27e   :  { %v392_v26 = vsub.f32 %v360_v48, %v374_v25  ;;  %v696_v25 = vld [vmem:[#allocation7 + $0x10] sm:$0xff] }
 0x27f   :  { %v1123_v27 = vpop.eup %817 }
 0x280   :  { %v402_v28 = vmul.f32 1.442695, %v392_v26  ;;  %v435_v29 = vsel %vm147_vm1, %v1123_v27, 0.0  ;;  %v695_v26 = vld [vmem:[#allocation7 + $0x8] sm:$0xff] }
 0x281   :  { %436 = vadd.xlane.f32.xlu2 %v435_v29 }
 0x282   :  { %819 = vpow2.f32 %v402_v28 }
 0x288   :  { %v820_v30 = vpop.eup %819 }
 0x289   :  { %v420_v31 = vsel %vm147_vm1, %v820_v30, 0.0 }
 0x28a   :  { %421 = vadd.xlane.f32.xlu1 %v420_v31 }
 0x28c   :  { %v796_v32 = vpop.permute.xlu1 %795 }
 0x28d   :  { %v798_v33 = vunpack.i.h.bf16 %v796_v32  ;;  %v797_v34 = vunpack.i.l.bf16 %v796_v32 }
 0x28f   :  { %475 = vmatpush.msrb.mxu3 %v797_v34  ;;  %527 = vmatpush.msrb.mxu1 %v798_v33 }
 0x290   :  { %v383_v35 = vpop.xlane.xlu2 %382 }
 0x291   :  { %v395_v36 = vsub.f32 %v363_v53, %v383_v35 }
 0x293   :  { %v408_v37 = vmul.f32 1.442695, %v395_v36 }
 0x295   :  { %821 = vpow2.f32 %v408_v37 }
 0x29b   :  { %v822_v38 = vpop.eup %821  ;;  %v416_v39 = vpop.xlane.xlu0 %415 }
 0x29c   :  { %823 = vrcp.f32 %v416_v39  ;;  %v429_v40 = vsel %vm147_vm1, %v822_v38, 0.0 }
 0x29d   :  { %430 = vadd.xlane.f32.xlu2 %v429_v40 }
 0x2a2   :  { %v824_v42 = vpop.eup %823 }
 0x2a3   :  { %v386_v43 = vpop.xlane.xlu0 %385  ;;  %805 = vrot.lane.b32.xlu1 %v804_v41, %s979_s11  ;;  %v446_v44 = vmul.f32 %v824_v42, %v810_v59  ;;  %v419_v7 = vpop.xlane.xlu2 %418 }
 0x2a4   :  { %v396_v45 = vsub.f32 %v364_v63, %v386_v43 }
 0x2a5   :  { %770 = vmatmul.msk.f32.vlgmr.msrb.gmra.mxu3 %vm147_vm1, %v446_v44 }
 0x2a6   :  { %v410_v46 = vmul.f32 1.442695, %v396_v45 }
 0x2a8   :  { %825 = vpow2.f32 %v410_v46 }
 0x2ab   :  { %584 = vrot.lane.b32.xlu1 %v1071_v18, %s979_s11 }
 0x2ae   :  { %v826_v47 = vpop.eup %825 }
 0x2af   :  { %v432_v48 = vsel %vm147_vm1, %v826_v47, 0.0 }
 0x2b0   :  { %433 = vadd.xlane.f32.xlu0 %v432_v48 }
 0x2b5   :  { %636 = vrot.lane.b32.xlu2 %v1067_v16, %s979_s11 }
 0x2c4   :  { %800 = vrot.lane.b32.xlu0 %v799_v13, %s979_s11 }
 0x2e3   :  { %v428_v49 = vpop.xlane.xlu2 %427 }
 0x2e6   :  { %v425_v10 = vpop.xlane.xlu0 %424 }
 0x2f4   :  { %v437_v18 = vpop.xlane.xlu2 %436 }
 0x2fd   :  { %v422_v14 = vpop.xlane.xlu1 %421 }
 0x2fe   :  { %827 = vrcp.f32 %v422_v14 }
 0x2ff   :  { %829 = vrcp.f32 %v419_v7 }
 0x304   :  { %v828_v50 = vpop.eup %827 }
 0x305   :  { %v448_v51 = vmul.f32 %v828_v50, %v820_v30  ;;  %v830_v53 = vpop.eup %829 }
 0x306   :  { %v447_v56 = vmul.f32 %v830_v53, %v1110_v0 }
 0x307   :  { %772 = vmatmul.msk.f32.vlgmr.msrb.gmra.mxu1 %vm147_vm1, %v448_v51 }
 0x310   :  { %v431_v52 = vpop.xlane.xlu2 %430 }
 0x311   :  { %831 = vrcp.f32 %v431_v52 }
 0x315   :  { %v806_v54 = vpop.permute.xlu1 %805 }
 0x316   :  { %v808_v16 = vunpack.i.h.bf16 %v806_v54  ;;  %v807_v55 = vunpack.i.l.bf16 %v806_v54 }
 0x317   :  { %v832_v12 = vpop.eup %831 }
 0x318   :  { %501 = vmatpush.msra.mxu0 %v807_v55  ;;  %631 = vmatpush.msra.mxu1 %v808_v16  ;;  %v451_v57 = vmul.f32 %v832_v12, %v822_v38  ;;  %v637_v6 = vpop.permute.xlu2 %636 }
 0x319   :  { %771 = vmatmul.msk.f32.vlgmr.msra.gmra.mxu0 %vm147_vm1, %v447_v56 }
 0x31d   :  { %v585_v13 = vpop.permute.xlu1 %584 }
 0x31e   :  { %605 = vmatpush.msrb.mxu0 %v585_v13 }
 0x321   :  { %775 = vmatmul.msk.f32.vlgmr.msrb.gmra.mxu0 %vm147_vm1, %v451_v57 }
 0x323   :  { %v434_v58 = vpop.xlane.xlu0 %433 }
 0x324   :  { %833 = vrcp.f32 %v434_v58 }
 0x325   :  { %835 = vrcp.f32 %v428_v49 }
 0x326   :  { %837 = vrcp.f32 %v425_v10 }
 0x327   :  { %839 = vrcp.f32 %v437_v18 }
 0x32a   :  { %v834_v59 = vpop.eup %833 }
 0x32b   :  { %v452_v60 = vmul.f32 %v834_v59, %v826_v47  ;;  %v836_v61 = vpop.eup %835 }
 0x32c   :  { %v838_v62 = vpop.eup %837  ;;  %v450_v2 = vmul.f32 %v836_v61, %v1115_v17 }
 0x32d   :  { %776 = vmatmul.msk.f32.vlgmr.msra.gmra.mxu1 %vm147_vm1, %v452_v60  ;;  %v449_v3 = vmul.f32 %v838_v62, %v1119_v20  ;;  %v840_v8 = vpop.eup %839  ;;  %v477_v20 = vpop.f32.mrf.mxu3 }
 0x32e   :  { %v453_v9 = vmul.f32 %v840_v8, %v1123_v27  ;;  %v694_v27 = vld [vmem:[#allocation7] sm:$0xff] }
 0x336   :  { %v801_v63 = vpop.permute.xlu0 %800 }
 0x337   :  { %v803_v0 = vunpack.i.h.bf16 %v801_v63  ;;  %v802_v1 = vunpack.i.l.bf16 %v801_v63 }
 0x339   :  { %553 = vmatpush.msrb.mxu2 %v803_v0  ;;  %579 = vmatpush.msra.mxu3 %v802_v1 }
 0x33a   :  { %773 = vmatmul.msk.f32.vlgmr.msrb.gmra.mxu2 %vm147_vm1, %v449_v3  ;;  %774 = vmatmul.msk.f32.vlgmr.msra.gmra.mxu3 %vm147_vm1, %v450_v2 }
 0x33b   :  { %657 = vmatpush.msra.mxu2 %v637_v6  ;;  %716 = vmatpush.msrb.mxu3 %v697_v24 }
 0x33d   :  { %717 = vmatpush.msrb.mxu3 %v696_v25 }
 0x33f   :  { %718 = vmatpush.msrb.mxu3 %v695_v26 }
 0x341   :  { %719 = vmatpush.msrb.mxu3 %v694_v27 }
 0x342   :  { %777 = vmatmul.msk.f32.vlgmr.msra.gmra.mxu2 %vm147_vm1, %v453_v9 }
 0x384   :  { %v529_v11 = vpop.f32.mrf.mxu1 }
 0x385   :  { %664 = vrot.lane.b32.xlu0 %v529_v11, %s971_s24 }
 0x396   :  { %v503_v15 = vpop.f32.mrf.mxu0 }
 0x39e   :  { %v607_v19 = vpop.f32.mrf.mxu0 }
 0x3aa   :  { %v633_v17 = vpop.f32.mrf.mxu1 }
 0x3ab   :  { %680 = vrot.lane.b32.xlu0 %v633_v17, %s980_s12 }
 0x3b3   :  { %674 = vrot.lane.b32.xlu0 %v607_v19, %s981_s13 }
 0x3bd   :  { %v555_v21 = vpop.f32.mrf.mxu2  ;;  %v581_v22 = vpop.f32.mrf.mxu3 }
 0x3be   :  { %672 = vrot.lane.b32.xlu1 %v581_v22, %s981_s13 }
 0x3c5   :  { %v659_v23 = vpop.f32.mrf.mxu2 }
 0x3c6   :  { %682 = vrot.lane.b32.xlu2 %v659_v23, %s980_s12  ;;  %666 = vrot.lane.b32.xlu1 %v555_v21, %s971_s24 }
 0x3f7   :  { %v665_v28 = vpop.permute.xlu0 %664 }
 0x3f8   :  { %v686_v30 = vsel %vm147_vm1, %v477_v20, %v665_v28 }
 0x41d   :  { %v681_v29 = vpop.permute.xlu0 %680 }
 0x420   :  { %v683_v37 = vpop.permute.xlu2 %682 }
 0x425   :  { %v675_v35 = vpop.permute.xlu0 %674 }
 0x430   :  { %v673_v31 = vpop.permute.xlu1 %672 }
 0x431   :  { %v689_v32 = vsel %vm688_vm3, %v686_v30, %v673_v31 }
 0x432   :  { %v692_v33 = vsel %vm691_vm4, %v689_v32, %v681_v29 }
 0x433   :  { %778 = vmatmul.msk.f32.vlgmr.msrb.gmra.mxu3 %vm85_vm0, %v692_v33 }
 0x438   :  { %v667_v34 = vpop.permute.xlu1 %666 }
 0x439   :  { %v687_v36 = vsel %vm147_vm1, %v503_v15, %v667_v34 }
 0x43a   :  { %v690_v38 = vsel %vm688_vm3, %v687_v36, %v675_v35 }
 0x43b   :  { %v693_v39 = vsel %vm691_vm4, %v690_v38, %v683_v37 }
 0x43c   :  { %779 = vmatmul.msk.f32.gmra.mxu3 %vm85_vm0, %v693_v39 }
 0x4b6   :  { %v721_v40 = vpop.f32.mrf.mxu3 }
 0x4b7   :  { %v727_v41 = vadd.f32 %v721_v40, %v1029_v4 }
 0x4b9   :  { %729 = vst.msk [vmem:[#allocation10] sm:$0xff] %vm85_vm0, %v727_v41 }
 0x4bf   :  { %v724_v42 = vpop.f32.mrf.mxu3 }
 0x4c0   :  { %v728_v43 = vadd.f32 %v724_v42, %v1033_v5 }
 0x4c2   :  { %730 = vst.msk [vmem:[#allocation10 + $0x8] sm:$0xff] %vm85_vm0, %v728_v43 }
 0x4c3   :  { %743 = dma.vmem_to_hbm [thread:$0]  %s736_s15, 256, %s738_s18, [#allocation4], %s970_s23, %s970_s23, %s971_s24  }
 0x4c4   :  { %967 = dma.done.wait [#allocation4], 256  }
 0x4c5   :  { %968 = vsyncadd [#allocation4], 4294967040 }
 0x4c6   :  { %748 = vsyncpa [#allocation3], 1 }
 0x4c7   :  { %749 = vsyncpa [#allocation6], 1 }
 0x4c8   :  { %750 = vsyncpa [#allocation9], 1 }
 0x4c9   :  { %751 = vsyncpa [#allocation4], 1 }

</bundles_post_ra>
